<compile_context>
chip_gen: v7x
topology: tpu7x:2x2x1
jax: 0.10.0
libtpu: 0.0.40
codegen_flags: <defaults>
</compile_context>

<pallas_src>
import jax
import jax.numpy as jnp
from jax.experimental import pallas as pl
from jax.experimental.pallas import tpu as pltpu


# ---------------------------------------------------------------------------
# Kernel
# ---------------------------------------------------------------------------
def mlp_kernel(x_ref, w1_ref, b1_ref, w2_ref, b2_ref, o_ref):
    # Cast x to the weights' compute dtype in-kernel (VPU cast hides under the
    # MXU) instead of materializing a casted copy of x in HBM in the wrapper.
    x = x_ref[...].astype(w1_ref.dtype)
    h = jnp.dot(x, w1_ref[...], preferred_element_type=jnp.float32)    # MXU, f32 acc
    h = jnp.maximum(h + b1_ref[...], 0.0)                              # bias + ReLU in f32 (VPU)
    y = jnp.dot(h.astype(w2_ref.dtype), w2_ref[...],
                preferred_element_type=jnp.float32)                    # MXU, f32 acc
    o_ref[...] = (y + b2_ref[...]).astype(o_ref.dtype)


# ---------------------------------------------------------------------------
# Helpers
# ---------------------------------------------------------------------------
def _round_up(n, m):
    return ((n + m - 1) // m) * m


def _lane_pad(d):
    # Full-extent blocks are always legal, so padding is never *required*.
    # Pad to a lane multiple only when the dim is already >128 and misaligned
    # (keeps stores lane-dense without inflating tiny dims 8-16x).
    return _round_up(d, 128) if (d > 128 and d % 128 != 0) else d


def _pick_tb(B):
    # Tiny batches: a single full-extent block. Otherwise aim for >=4 grid
    # steps (>=2 per TensorCore on v7x megacore) with a sublane-aligned (x8)
    # tile, capped at 256 so large batches issue full 256-wide MXU M passes
    # on v6e/v7x (128 already saturates v5e).
    if B <= 64:
        return B
    return min(256, max(8, (B // 4) // 8 * 8))


def prepare_params(w1, b1, w2, b2, *, compute_dtype=None):
    """One-time weight preparation (call at init, NOT per forward).

    Pads hidden/out dims only when they are >128 and misaligned, and casts the
    weight matrices to `compute_dtype` (bf16 halves weight DMA bytes and uses
    the fast MXU path on v5e/v6e/v7x alike). Biases stay f32 for the VPU add.
    Hoisting this out of the forward removes all per-call pad/cast HBM traffic.
    Returns ((w1, b1, w2, b2), out_size).
    """
    compute_dtype = jnp.dtype(compute_dtype) if compute_dtype is not None else w1.dtype
    hidden = w1.shape[1]
    out_size = w2.shape[1]
    hid_p, out_p = _lane_pad(hidden), _lane_pad(out_size)
    w1_p = jnp.pad(w1, ((0, 0), (0, hid_p - hidden))).astype(compute_dtype)
    b1_p = jnp.pad(b1, ((0, 0), (0, hid_p - hidden))).astype(jnp.float32)
    w2_p = jnp.pad(w2, ((0, hid_p - hidden), (0, out_p - out_size))).astype(compute_dtype)
    b2_p = jnp.pad(b2, ((0, 0), (0, out_p - out_size))).astype(jnp.float32)
    return (w1_p, b1_p, w2_p, b2_p), out_size


# Single-buffer constant weight blocks via pl.Buffered(1); flipped to False
# automatically if this JAX build rejects pipeline_mode on pallas_call specs.
_SINGLE_BUFFER_WEIGHTS = True


def mlp_forward(x, params, out_size=None, *, tb=None):
    """x: (B, in_size); params from prepare_params(). Returns (B, out_size) in x.dtype."""
    w1_p, b1_p, w2_p, b2_p = params
    B, in_size = x.shape
    hid_p = w1_p.shape[1]
    out_p = w2_p.shape[1]
    out_size = out_p if out_size is None else out_size
    out_dtype = x.dtype

    tb = _pick_tb(B) if tb is None else max(8, min(tb, B))
    grid = (pl.cdiv(B, tb),)   # no batch padding: partial final block is masked by Pallas

    nbytes = lambda a: a.size * a.dtype.itemsize
    cost = pl.CostEstimate(
        flops=2 * B * (in_size * hid_p + hid_p * out_p),
        transcendentals=0,
        bytes_accessed=(nbytes(x) + nbytes(w1_p) + nbytes(b1_p) + nbytes(w2_p)
                        + nbytes(b2_p) + B * out_p * jnp.dtype(out_dtype).itemsize),
    )

    # VMEM budget: resident weights/biases, double-buffered x/out tiles and the
    # f32 intermediates; 2x margin, floor 16 MiB, cap 48 MiB (fits v7x 64 MiB).
    weight_bytes = nbytes(w1_p) + nbytes(b1_p) + nbytes(w2_p) + nbytes(b2_p)
    tile_bytes = (2 * tb * in_size * x.dtype.itemsize
                  + 2 * tb * out_p * jnp.dtype(out_dtype).itemsize
                  + tb * hid_p * 4 + tb * out_p * 4)
    vmem_limit = int(min(48 << 20, max(16 << 20, 2 * (2 * weight_bytes + tile_bytes))))

    def run(single_buffer):
        def wspec(shape):
            # Constant index_map -> block DMA'd once; Buffered(1) drops the
            # pointless second buffer and halves resident-weight VMEM.
            if single_buffer:
                return pl.BlockSpec(shape, lambda i: (0, 0), pipeline_mode=pl.Buffered(1))
            return pl.BlockSpec(shape, lambda i: (0, 0))

        return pl.pallas_call(
            mlp_kernel,
            out_shape=jax.ShapeDtypeStruct((B, out_p), out_dtype),
            grid_spec=pltpu.PrefetchScalarGridSpec(
                num_scalar_prefetch=0,
                grid=grid,
                in_specs=[
                    pl.BlockSpec((tb, in_size), lambda i: (i, 0)),  # x tile (streamed)
                    wspec((in_size, hid_p)),                        # W1 (resident)
                    wspec((1, hid_p)),                              # b1 (resident)
                    wspec((hid_p, out_p)),                          # W2 (resident)
                    wspec((1, out_p)),                              # b2 (resident)
                ],
                out_specs=pl.BlockSpec((tb, out_p), lambda i: (i, 0)),
            ),
            compiler_params=pltpu.CompilerParams(
                dimension_semantics=("parallel",),   # batch axis -> megacore / 2 TCs
                vmem_limit_bytes=vmem_limit,
            ),
            cost_estimate=cost,
        )(x, w1_p, b1_p, w2_p, b2_p)

    global _SINGLE_BUFFER_WEIGHTS
    if _SINGLE_BUFFER_WEIGHTS:
        try:
            y = run(single_buffer=True)
        except Exception:
            _SINGLE_BUFFER_WEIGHTS = False   # this build rejects Buffered(1); use default
            y = run(single_buffer=False)
    else:
        y = run(single_buffer=False)

    return y if out_p == out_size else y[:, :out_size]


def init_params(key, in_size, hidden_size, out_size):
    """Deterministic init mimicking nn.Linear's uniform(-1/sqrt(fan_in), +1/sqrt(fan_in)).
    Weights are stored pre-transposed: (in_features, out_features)."""
    k1, k2, k3, k4 = jax.random.split(key, 4)
    lim1 = 1.0 / jnp.sqrt(in_size)
    lim2 = 1.0 / jnp.sqrt(hidden_size)
    w1 = jax.random.uniform(k1, (in_size, hidden_size), jnp.float32, -lim1, lim1)
    b1 = jax.random.uniform(k2, (1, hidden_size), jnp.float32, -lim1, lim1)
    w2 = jax.random.uniform(k3, (hidden_size, out_size), jnp.float32, -lim2, lim2)
    b2 = jax.random.uniform(k4, (1, out_size), jnp.float32, -lim2, lim2)
    return w1, b1, w2, b2


if __name__ == "__main__":
    # Module-consistent small feature dims; batch sized so the grid has 4 steps.
    in_size, hidden_size, out_size = 16, 32, 8
    batch = 256

    key = jax.random.PRNGKey(0)
    kx, kp = jax.random.split(key)
    x = jax.random.normal(kx, (batch, in_size), jnp.float32)
    w1, b1, w2, b2 = init_params(kp, in_size, hidden_size, out_size)

    # Pure-JAX reference of the same forward pass.
    y_ref = jnp.maximum(x @ w1 + b1, 0.0) @ w2 + b2

    # f32 compute path (exact). Weight prep is one-time, outside the hot path.
    params_f32, out_sz = prepare_params(w1, b1, w2, b2)
    y = jax.block_until_ready(mlp_forward(x, params_f32, out_sz))
    assert y.shape == (batch, out_size)
    assert jnp.allclose(y, y_ref, atol=1e-5, rtol=1e-5)

    # bf16 MXU path (valid on v5e/v6e/v7x), f32 accumulation -> looser tol.
    params_bf16, _ = prepare_params(w1, b1, w2, b2, compute_dtype=jnp.bfloat16)
    y_bf16 = jax.block_until_ready(mlp_forward(x, params_bf16, out_sz))
    assert y_bf16.shape == (batch, out_size)
    assert jnp.allclose(y_bf16, y_ref, atol=5e-2, rtol=5e-2)

    print("KERNEL_OK")
</pallas_src>

<mosaic_0001>
module attributes {stable_mosaic.version = 11 : i64} {
  func.func @mlp_kernel(%arg0: i32, %arg1: memref<64x16xf32, #tpu.memory_space<vmem>>, %arg2: memref<16x32xf32, #tpu.memory_space<vmem>>, %arg3: memref<1x32xf32, #tpu.memory_space<vmem>>, %arg4: memref<32x8xf32, #tpu.memory_space<vmem>>, %arg5: memref<1x8xf32, #tpu.memory_space<vmem>>, %arg6: memref<64x8xf32, #tpu.memory_space<vmem>>) attributes {dimension_semantics = [#tpu.dimension_semantics<parallel>], iteration_bounds = array<i64: 4>, scalar_prefetch = 0 : i64, scratch_operands = 0 : i64, tpu.core_type = #tpu.core_type<tc>, window_params = [{transform_indices = @transform_0, window_bounds = array<i64: 64, 16>}, {pipeline_mode = #tpu.pipeline_mode<synchronous>, transform_indices = @transform_1, window_bounds = array<i64: 16, 32>}, {pipeline_mode = #tpu.pipeline_mode<synchronous>, transform_indices = @transform_2, window_bounds = array<i64: 1, 32>}, {pipeline_mode = #tpu.pipeline_mode<synchronous>, transform_indices = @transform_3, window_bounds = array<i64: 32, 8>}, {pipeline_mode = #tpu.pipeline_mode<synchronous>, transform_indices = @transform_4, window_bounds = array<i64: 1, 8>}, {transform_indices = @transform_5, window_bounds = array<i64: 64, 8>}]} {
    %c0 = arith.constant 0 : index
    %c0_0 = arith.constant 0 : index
    %0 = vector.load %arg1[%c0, %c0_0] : memref<64x16xf32, #tpu.memory_space<vmem>>, vector<64x16xf32>
    %c0_1 = arith.constant 0 : index
    %c0_2 = arith.constant 0 : index
    %1 = vector.load %arg2[%c0_1, %c0_2] : memref<16x32xf32, #tpu.memory_space<vmem>>, vector<16x32xf32>
    %cst = arith.constant dense<0.000000e+00> : vector<64x32xf32>
    %2 = tpu.matmul %0, %1, %cst {dimension_numbers = #tpu.dot_dimension_numbers<[1], [0], [0], [1], [0, 0, 1, 1], [], []>} : vector<64x16xf32>, vector<16x32xf32>, vector<64x32xf32> -> vector<64x32xf32>
    %c0_3 = arith.constant 0 : index
    %c0_4 = arith.constant 0 : index
    %3 = vector.load %arg3[%c0_3, %c0_4] : memref<1x32xf32, #tpu.memory_space<vmem>>, vector<1x32xf32>
    %4 = vector.broadcast %3 : vector<1x32xf32> to vector<64x32xf32>
    %5 = arith.addf %2, %4 : vector<64x32xf32>
    %cst_5 = arith.constant 0.000000e+00 : f32
    %6 = vector.broadcast %cst_5 : f32 to vector<64x32xf32>
    %7 = arith.maximumf %5, %6 : vector<64x32xf32>
    %c0_6 = arith.constant 0 : index
    %c0_7 = arith.constant 0 : index
    %8 = vector.load %arg4[%c0_6, %c0_7] : memref<32x8xf32, #tpu.memory_space<vmem>>, vector<32x8xf32>
    %cst_8 = arith.constant dense<0.000000e+00> : vector<64x8xf32>
    %9 = tpu.matmul %7, %8, %cst_8 {dimension_numbers = #tpu.dot_dimension_numbers<[1], [0], [0], [1], [0, 0, 1, 1], [], []>} : vector<64x32xf32>, vector<32x8xf32>, vector<64x8xf32> -> vector<64x8xf32>
    %c0_9 = arith.constant 0 : index
    %c0_10 = arith.constant 0 : index
    %10 = vector.load %arg5[%c0_9, %c0_10] : memref<1x8xf32, #tpu.memory_space<vmem>>, vector<1x8xf32>
    %11 = vector.broadcast %10 : vector<1x8xf32> to vector<64x8xf32>
    %12 = arith.addf %9, %11 : vector<64x8xf32>
    %c0_11 = arith.constant 0 : index
    %c0_12 = arith.constant 0 : index
    %13 = vector.load %arg6[%c0_11, %c0_12] : memref<64x8xf32, #tpu.memory_space<vmem>>, vector<64x8xf32>
    tpu.vector_store %arg6[%c0_11, %c0_12], %12 {strides = array<i32>} : memref<64x8xf32, #tpu.memory_space<vmem>>, vector<64x8xf32>,
    return
  }
  func.func @transform_0(%arg0: i32) -> (i32, i32) {
    %c0_i32 = arith.constant 0 : i32
    %c0_i32_0 = arith.constant 0 : i32
    return %arg0, %c0_i32 : i32, i32
  }
  func.func @transform_1(%arg0: i32) -> (i32, i32) {
    %c0_i32 = arith.constant 0 : i32
    %c0_i32_0 = arith.constant 0 : i32
    %c0_i32_1 = arith.constant 0 : i32
    return %c0_i32, %c0_i32_0 : i32, i32
  }
  func.func @transform_2(%arg0: i32) -> (i32, i32) {
    %c0_i32 = arith.constant 0 : i32
    %c0_i32_0 = arith.constant 0 : i32
    %c0_i32_1 = arith.constant 0 : i32
    return %c0_i32, %c0_i32_0 : i32, i32
  }
  func.func @transform_3(%arg0: i32) -> (i32, i32) {
    %c0_i32 = arith.constant 0 : i32
    %c0_i32_0 = arith.constant 0 : i32
    %c0_i32_1 = arith.constant 0 : i32
    return %c0_i32, %c0_i32_0 : i32, i32
  }
  func.func @transform_4(%arg0: i32) -> (i32, i32) {
    %c0_i32 = arith.constant 0 : i32
    %c0_i32_0 = arith.constant 0 : i32
    %c0_i32_1 = arith.constant 0 : i32
    return %c0_i32, %c0_i32_0 : i32, i32
  }
  func.func @transform_5(%arg0: i32) -> (i32, i32) {
    %c0_i32 = arith.constant 0 : i32
    %c0_i32_0 = arith.constant 0 : i32
    return %arg0, %c0_i32 : i32, i32
  }
}

module attributes {stable_mosaic.version = 11 : i64} {
  func.func @mlp_kernel(%arg0: i32, %arg1: memref<64x16xf32, #tpu.memory_space<vmem>>, %arg2: memref<16x32xf32, #tpu.memory_space<vmem>>, %arg3: memref<1x32xf32, #tpu.memory_space<vmem>>, %arg4: memref<32x8xf32, #tpu.memory_space<vmem>>, %arg5: memref<1x8xf32, #tpu.memory_space<vmem>>, %arg6: memref<64x8xf32, #tpu.memory_space<vmem>>) attributes {dimension_semantics = [#tpu.dimension_semantics<parallel>], iteration_bounds = array<i64: 4>, scalar_prefetch = 0 : i64, scratch_operands = 0 : i64, tpu.core_type = #tpu.core_type<tc>, window_params = [{transform_indices = @transform_0, window_bounds = array<i64: 64, 16>}, {pipeline_mode = #tpu.pipeline_mode<synchronous>, transform_indices = @transform_1, window_bounds = array<i64: 16, 32>}, {pipeline_mode = #tpu.pipeline_mode<synchronous>, transform_indices = @transform_2, window_bounds = array<i64: 1, 32>}, {pipeline_mode = #tpu.pipeline_mode<synchronous>, transform_indices = @transform_3, window_bounds = array<i64: 32, 8>}, {pipeline_mode = #tpu.pipeline_mode<synchronous>, transform_indices = @transform_4, window_bounds = array<i64: 1, 8>}, {transform_indices = @transform_5, window_bounds = array<i64: 64, 8>}]} {
    %c0 = arith.constant 0 : index
    %c0_0 = arith.constant 0 : index
    %0 = vector.load %arg1[%c0, %c0_0] : memref<64x16xf32, #tpu.memory_space<vmem>>, vector<64x16xf32>
    %c0_1 = arith.constant 0 : index
    %c0_2 = arith.constant 0 : index
    %1 = vector.load %arg2[%c0_1, %c0_2] : memref<16x32xf32, #tpu.memory_space<vmem>>, vector<16x32xf32>
    %cst = arith.constant dense<0.000000e+00> : vector<64x32xf32>
    %2 = tpu.matmul %0, %1, %cst {dimension_numbers = #tpu.dot_dimension_numbers<[1], [0], [0], [1], [0, 0, 1, 1], [], []>} : vector<64x16xf32>, vector<16x32xf32>, vector<64x32xf32> -> vector<64x32xf32>
    %c0_3 = arith.constant 0 : index
    %c0_4 = arith.constant 0 : index
    %3 = vector.load %arg3[%c0_3, %c0_4] : memref<1x32xf32, #tpu.memory_space<vmem>>, vector<1x32xf32>
    %4 = vector.broadcast %3 : vector<1x32xf32> to vector<64x32xf32>
    %5 = arith.addf %2, %4 : vector<64x32xf32>
    %cst_5 = arith.constant 0.000000e+00 : f32
    %6 = vector.broadcast %cst_5 : f32 to vector<64x32xf32>
    %7 = arith.maximumf %5, %6 : vector<64x32xf32>
    %c0_6 = arith.constant 0 : index
    %c0_7 = arith.constant 0 : index
    %8 = vector.load %arg4[%c0_6, %c0_7] : memref<32x8xf32, #tpu.memory_space<vmem>>, vector<32x8xf32>
    %cst_8 = arith.constant dense<0.000000e+00> : vector<64x8xf32>
    %9 = tpu.matmul %7, %8, %cst_8 {dimension_numbers = #tpu.dot_dimension_numbers<[1], [0], [0], [1], [0, 0, 1, 1], [], []>} : vector<64x32xf32>, vector<32x8xf32>, vector<64x8xf32> -> vector<64x8xf32>
    %c0_9 = arith.constant 0 : index
    %c0_10 = arith.constant 0 : index
    %10 = vector.load %arg5[%c0_9, %c0_10] : memref<1x8xf32, #tpu.memory_space<vmem>>, vector<1x8xf32>
    %11 = vector.broadcast %10 : vector<1x8xf32> to vector<64x8xf32>
    %12 = arith.addf %9, %11 : vector<64x8xf32>
    %c0_11 = arith.constant 0 : index
    %c0_12 = arith.constant 0 : index
    %13 = vector.load %arg6[%c0_11, %c0_12] : memref<64x8xf32, #tpu.memory_space<vmem>>, vector<64x8xf32>
    tpu.vector_store %arg6[%c0_11, %c0_12], %12 {strides = array<i32>} : memref<64x8xf32, #tpu.memory_space<vmem>>, vector<64x8xf32>,
    return
  }
  func.func @transform_0(%arg0: i32) -> (i32, i32) {
    %c0_i32 = arith.constant 0 : i32
    %c0_i32_0 = arith.constant 0 : i32
    return %arg0, %c0_i32 : i32, i32
  }
  func.func @transform_1(%arg0: i32) -> (i32, i32) {
    %c0_i32 = arith.constant 0 : i32
    %c0_i32_0 = arith.constant 0 : i32
    %c0_i32_1 = arith.constant 0 : i32
    return %c0_i32, %c0_i32_0 : i32, i32
  }
  func.func @transform_2(%arg0: i32) -> (i32, i32) {
    %c0_i32 = arith.constant 0 : i32
    %c0_i32_0 = arith.constant 0 : i32
    %c0_i32_1 = arith.constant 0 : i32
    return %c0_i32, %c0_i32_0 : i32, i32
  }
  func.func @transform_3(%arg0: i32) -> (i32, i32) {
    %c0_i32 = arith.constant 0 : i32
    %c0_i32_0 = arith.constant 0 : i32
    %c0_i32_1 = arith.constant 0 : i32
    return %c0_i32, %c0_i32_0 : i32, i32
  }
  func.func @transform_4(%arg0: i32) -> (i32, i32) {
    %c0_i32 = arith.constant 0 : i32
    %c0_i32_0 = arith.constant 0 : i32
    %c0_i32_1 = arith.constant 0 : i32
    return %c0_i32, %c0_i32_0 : i32, i32
  }
  func.func @transform_5(%arg0: i32) -> (i32, i32) {
    %c0_i32 = arith.constant 0 : i32
    %c0_i32_0 = arith.constant 0 : i32
    return %arg0, %c0_i32 : i32, i32
  }
}

</mosaic_0001>

<bundles_post_ra>
// kernel: tpu_custom_call.1
= control target key start
LH: loop header
LB: loop body
LE: loop exit
PB: predicated region body
PF: predicated region fallthrough
CT: control target
= control target key end

     0   :  { %s734_s18 = smov 0   ;;  %s806_s0 = inlined_call_operand.vmem [shape: f32[256,16], index: 0, kind: input, shape index: {}]   ;;  %s807_s1 = inlined_call_operand.vmem [shape: f32[16,32], index: 1, kind: input, shape index: {}]   ;;  %s808_s2 = inlined_call_operand.vmem [shape: f32[1,32], index: 2, kind: input, shape index: {}]   ;;  %s809_s3 = inlined_call_operand.vmem [shape: f32[32,8], index: 3, kind: input, shape index: {}]   ;;  %s810_s4 = inlined_call_operand.vmem [shape: f32[1,8], index: 4, kind: input, shape index: {}]   ;;  %s811_s5 = inlined_call_operand.vmem [shape: f32[256,8], index: 5, kind: output, shape index: {}]  }
   0x1 LB: > { %s589_s19 = sadd.s32 4294967295, %s702_s18   ;;  %p593_p0 = scmp.ge.s32.totalorder %s702_s18, 1  ;;  %s702_s18 = sphi %s734_s18, %s15_s18  }
   0x2   : > { %p188_p1 = scmp.lt.s32.totalorder %s702_s18, 5 }
   0x4   : > { %p189_p2 = pnand %p593_p0, %p188_p1 }
   0x5   : > { %v236_v0 = vld [vmem:[%s807_s1] sm:$0xff] (!%p189_p2)  ;;  %v237_v1 = vld [vmem:[%s807_s1 + $0x8] sm:$0xff] (!%p189_p2)  ;;  %s594_s24 = sshll.u32 (!%p189_p2), %s589_s19, 3  ;;  %vm245_vm0 = vcmask (!%p189_p2), 130048   ;;  %v385_v14 = vld [vmem:[%s809_s3 + $0x10] sm:$0xff] (!%p189_p2)  ;;  %vm394_vm1 = vcmask (!%p189_p2), 261120  }
   0x6   : > { %192 = sbr.rel (%p189_p2) target bundleno = 464 (0x1d0), region = 40  ;;  %v383_v2 = vld [vmem:[%s809_s3] sm:$0xff] (!%p189_p2)  ;;  %v676_v3 = vpack.c.bf16 (!%p189_p2), %v237_v1, %v236_v0  ;;  %p217_p3 = scmp.lt.s32.totalorder (!%p189_p2), %s594_s24, 31  ;;  %v384_v4 = vld [vmem:[%s809_s3 + $0x8] sm:$0xff] (!%p189_p2)  ;;  %v386_v15 = vld [vmem:[%s809_s3 + $0x18] sm:$0xff] (!%p189_p2)  ;;  %vm524_vm2 = vcmask (!%p189_p2), 64512  }
   0x7   : > { %v680_v5 = vpack.c.bf16 (!%p189_p2), %v384_v4, %v383_v2  ;;  %v684_v16 = vpack.c.bf16 (!%p189_p2), %v386_v15, %v385_v14  ;;  %v598_v17 = vld [vmem:[%s808_s2] ss:$0 sm:$0xff] (!%p189_p2) }
   0x8   : > { %677 = vmatprep.subr.bf16.mxu0 (!%p189_p2), %v676_v3  ;;  %v607_v42 = vld [vmem:[%s810_s4] ss:$0 sm:$0xff] (!%p189_p2) }
   0x9   : > { %679 = vmatpush3.bf16.msra.mxu0 (!%p189_p2), %v676_v3  ;;  %681 = vmatprep.subr.bf16.mxu1 (!%p189_p2), %v680_v5 }
   0xa   : > { %683 = vmatpush3.bf16.msra.mxu1 (!%p189_p2), %v680_v5 }
   0xb   : > { %685 = vmatprep.subr.bf16.mxu1 (!%p189_p2), %v684_v16 }
   0xd   : > { %s813_s24 = smov (!%p217_p3, %s594_s24), 31 }
   0xe   : > { %s595_s29 = sshll.u32 %s813_s24, 3  ;;  %687 = vmatpush3.bf16.msra.mxu1 %v684_v16 }
   0xf   : > { %s220_s7 = scalar_lea.vmem %s806_s0, %s595_s29  ;;  %s226_s19 = scalar_lea.vmem %s811_s5, %s595_s29 }
  0x10   : > { %v228_v6 = vld [vmem:[%s220_s7] sm:$0xff]  ;;  %v229_v7 = vld [vmem:[%s220_s7 + $0x8] sm:$0xff]  ;;  %v230_v8 = vld [vmem:[%s220_s7 + $0x10] sm:$0xff] }
  0x11   : > { %644 = vmatprep.mubr.msk.f32.mxu0 %vm245_vm0, %v228_v6  ;;  %v231_v9 = vld [vmem:[%s220_s7 + $0x18] sm:$0xff]  ;;  %v232_v10 = vld [vmem:[%s220_s7 + $0x20] sm:$0xff]  ;;  %v233_v11 = vld [vmem:[%s220_s7 + $0x28] sm:$0xff] }
  0x12   : > { %645 = vmatmul.mubr.msk.f32.vlgmr.msra.gmra.mrb[0].mxu0 %vm245_vm0, %v229_v7  ;;  %v234_v12 = vld [vmem:[%s220_s7 + $0x30] sm:$0xff]  ;;  %v235_v13 = vld [vmem:[%s220_s7 + $0x38] sm:$0xff] }
  0x13   : > { %647 = vmatprep.mubr.msk.f32.mxu0 %vm245_vm0, %v230_v8 }
  0x16   : > { %648 = vmatmul.mubr.msk.f32.gmra.mrb[2].mxu0 %vm245_vm0, %v231_v9 }
  0x17   : > { %650 = vmatprep.mubr.msk.f32.mxu0 %vm245_vm0, %v232_v10 }
  0x1a   : > { %651 = vmatmul.mubr.msk.f32.gmra.mrb[4].mxu0 %vm245_vm0, %v233_v11 }
  0x1b   : > { %653 = vmatprep.mubr.msk.f32.mxu0 %vm245_vm0, %v234_v12 }
  0x1e   : > { %654 = vmatmul.mubr.msk.f32.gmra.mrb[6].mxu0 %vm245_vm0, %v235_v13 }
  0xe5   : > { %v646_v18 = vpop.f32.mrb[0].mxu0 }
  0xe6   : > { %v342_v19 = vadd.f32 %v646_v18, %v598_v17  ;;  %v336_v20 = vpop.f32.mrb[1].mxu0 }
  0xe7   : > { %v337_v21 = vadd.f32 %v598_v17, %v336_v20 }
  0xe8   : > { %v376_v24 = vmax.f32 %v342_v19, 0.0 }
  0xe9   : > { %v375_v22 = vmax.f32 %v337_v21, 0.0  ;;  %v649_v23 = vpop.f32.mrb[2].mxu0 }
  0xea   : > { %v352_v25 = vadd.f32 %v649_v23, %v598_v17  ;;  %v346_v26 = vpop.f32.mrb[3].mxu0 }
  0xeb   : > { %v347_v27 = vadd.f32 %v598_v17, %v346_v26  ;;  %664 = vmatprep.mubr.msk.f32.mxu1 %vm394_vm1, %v375_v22 }
  0xec   : > { %665 = vmatmul.mubr.msk.f32.vlgmr.msra.gmra.mrb[0].mxu1 %vm394_vm1, %v376_v24  ;;  %v378_v30 = vmax.f32 %v352_v25, 0.0 }
  0xed   : > { %v377_v28 = vmax.f32 %v347_v27, 0.0  ;;  %v652_v29 = vpop.f32.mrb[4].mxu0 }
  0xee   : > { %v362_v31 = vadd.f32 %v652_v29, %v598_v17  ;;  %v356_v32 = vpop.f32.mrb[5].mxu0 }
  0xef   : > { %v357_v33 = vadd.f32 %v598_v17, %v356_v32  ;;  %667 = vmatprep.mubr.msk.f32.mxu1 %vm394_vm1, %v377_v28 }
  0xf0   : > { %668 = vmatmul.mubr.msk.f32.gmra.mrb[2].mxu1 %vm394_vm1, %v378_v30  ;;  %v380_v36 = vmax.f32 %v362_v31, 0.0 }
  0xf1   : > { %v379_v34 = vmax.f32 %v357_v33, 0.0  ;;  %v655_v35 = vpop.f32.mrb[6].mxu0 }
  0xf2   : > { %v372_v37 = vadd.f32 %v655_v35, %v598_v17  ;;  %v366_v38 = vpop.f32.mrb[7].mxu0 }
  0xf3   : > { %v367_v39 = vadd.f32 %v598_v17, %v366_v38  ;;  %670 = vmatprep.mubr.msk.f32.mxu1 %vm394_vm1, %v379_v34 }
  0xf4   : > { %671 = vmatmul.mubr.msk.f32.gmra.mrb[4].mxu1 %vm394_vm1, %v380_v36  ;;  %v382_v41 = vmax.f32 %v372_v37, 0.0 }
  0xf5   : > { %v381_v40 = vmax.f32 %v367_v39, 0.0 }
  0xf7   : > { %673 = vmatprep.mubr.msk.f32.mxu1 %vm394_vm1, %v381_v40 }
  0xf8   : > { %674 = vmatmul.mubr.msk.f32.gmra.mrb[6].mxu1 %vm394_vm1, %v382_v41 }
 0x1bf   : > { %v666_v43 = vpop.f32.mrb[0].mxu1 }
 0x1c0   : > { %v491_v44 = vadd.f32 %v666_v43, %v607_v42  ;;  %v485_v45 = vpop.f32.mrb[1].mxu1 }
 0x1c1   : > { %v486_v46 = vadd.f32 %v607_v42, %v485_v45 }
 0x1c2   : > { %526 = vst.msk [vmem:[%s226_s19 + $0x8] sm:$0xff] %vm524_vm2, %v491_v44 }
 0x1c3   : > { %525 = vst.msk [vmem:[%s226_s19] sm:$0xff] %vm524_vm2, %v486_v46  ;;  %v669_v47 = vpop.f32.mrb[2].mxu1 }
 0x1c4   : > { %v501_v48 = vadd.f32 %v669_v47, %v607_v42  ;;  %v495_v49 = vpop.f32.mrb[3].mxu1 }
 0x1c5   : > { %v496_v50 = vadd.f32 %v607_v42, %v495_v49 }
 0x1c6   : > { %528 = vst.msk [vmem:[%s226_s19 + $0x18] sm:$0xff] %vm524_vm2, %v501_v48 }
 0x1c7   : > { %527 = vst.msk [vmem:[%s226_s19 + $0x10] sm:$0xff] %vm524_vm2, %v496_v50  ;;  %v672_v51 = vpop.f32.mrb[4].mxu1 }
 0x1c8   : > { %v511_v52 = vadd.f32 %v672_v51, %v607_v42  ;;  %v505_v53 = vpop.f32.mrb[5].mxu1 }
 0x1c9   : > { %v506_v54 = vadd.f32 %v607_v42, %v505_v53 }
 0x1ca   : > { %530 = vst.msk [vmem:[%s226_s19 + $0x28] sm:$0xff] %vm524_vm2, %v511_v52 }
 0x1cb   : > { %529 = vst.msk [vmem:[%s226_s19 + $0x20] sm:$0xff] %vm524_vm2, %v506_v54  ;;  %v675_v55 = vpop.f32.mrb[6].mxu1 }
 0x1cc   : > { %v521_v56 = vadd.f32 %v675_v55, %v607_v42  ;;  %v515_v57 = vpop.f32.mrb[7].mxu1 }
 0x1cd   : > { %v516_v58 = vadd.f32 %v607_v42, %v515_v57 }
 0x1ce   : > { %532 = vst.msk [vmem:[%s226_s19 + $0x38] sm:$0xff] %vm524_vm2, %v521_v56 }
 0x1cf   : > { %531 = vst.msk [vmem:[%s226_s19 + $0x30] sm:$0xff] %vm524_vm2, %v516_v58 }
 0x1d0 PF: > { %s15_s18 = sadd.s32 1, %s702_s18  }
 0x1d1   : > { %p12_p4 = scmp.ge.s32.totalorder %s15_s18, 6  }
 0x1d3   :  { %14 = sbr.rel (!%p12_p4) target bundleno = 1 (0x1), region = 70 }

// kernel: tpu_custom_call.1
= control target key start
LH: loop header
LB: loop body
LE: loop exit
PB: predicated region body
PF: predicated region fallthrough
CT: control target
= control target key end

     0   :  { %s734_s18 = smov 0   ;;  %s806_s0 = inlined_call_operand.vmem [shape: f32[256,16], index: 0, kind: input, shape index: {}]   ;;  %s807_s1 = inlined_call_operand.vmem [shape: f32[16,32], index: 1, kind: input, shape index: {}]   ;;  %s808_s2 = inlined_call_operand.vmem [shape: f32[1,32], index: 2, kind: input, shape index: {}]   ;;  %s809_s3 = inlined_call_operand.vmem [shape: f32[32,8], index: 3, kind: input, shape index: {}]   ;;  %s810_s4 = inlined_call_operand.vmem [shape: f32[1,8], index: 4, kind: input, shape index: {}]   ;;  %s811_s5 = inlined_call_operand.vmem [shape: f32[256,8], index: 5, kind: output, shape index: {}]  }
   0x1 LB: > { %s589_s19 = sadd.s32 4294967295, %s702_s18   ;;  %p593_p0 = scmp.ge.s32.totalorder %s702_s18, 1  ;;  %s702_s18 = sphi %s734_s18, %s15_s18  }
   0x2   : > { %p188_p1 = scmp.lt.s32.totalorder %s702_s18, 5 }
   0x4   : > { %p189_p2 = pnand %p593_p0, %p188_p1 }
   0x5   : > { %v236_v0 = vld [vmem:[%s807_s1] sm:$0xff] (!%p189_p2)  ;;  %v237_v1 = vld [vmem:[%s807_s1 + $0x8] sm:$0xff] (!%p189_p2)  ;;  %s594_s24 = sshll.u32 (!%p189_p2), %s589_s19, 3  ;;  %vm245_vm0 = vcmask (!%p189_p2), 130048   ;;  %v385_v14 = vld [vmem:[%s809_s3 + $0x10] sm:$0xff] (!%p189_p2)  ;;  %vm394_vm1 = vcmask (!%p189_p2), 261120  }
   0x6   : > { %192 = sbr.rel (%p189_p2) target bundleno = 464 (0x1d0), region = 40  ;;  %v383_v2 = vld [vmem:[%s809_s3] sm:$0xff] (!%p189_p2)  ;;  %v676_v3 = vpack.c.bf16 (!%p189_p2), %v237_v1, %v236_v0  ;;  %p217_p3 = scmp.lt.s32.totalorder (!%p189_p2), %s594_s24, 31  ;;  %v384_v4 = vld [vmem:[%s809_s3 + $0x8] sm:$0xff] (!%p189_p2)  ;;  %v386_v15 = vld [vmem:[%s809_s3 + $0x18] sm:$0xff] (!%p189_p2)  ;;  %vm524_vm2 = vcmask (!%p189_p2), 64512  }
   0x7   : > { %v680_v5 = vpack.c.bf16 (!%p189_p2), %v384_v4, %v383_v2  ;;  %v684_v16 = vpack.c.bf16 (!%p189_p2), %v386_v15, %v385_v14  ;;  %v598_v17 = vld [vmem:[%s808_s2] ss:$0 sm:$0xff] (!%p189_p2) }
   0x8   : > { %677 = vmatprep.subr.bf16.mxu0 (!%p189_p2), %v676_v3  ;;  %v607_v42 = vld [vmem:[%s810_s4] ss:$0 sm:$0xff] (!%p189_p2) }
   0x9   : > { %679 = vmatpush3.bf16.msra.mxu0 (!%p189_p2), %v676_v3  ;;  %681 = vmatprep.subr.bf16.mxu1 (!%p189_p2), %v680_v5 }
   0xa   : > { %683 = vmatpush3.bf16.msra.mxu1 (!%p189_p2), %v680_v5 }
   0xb   : > { %685 = vmatprep.subr.bf16.mxu1 (!%p189_p2), %v684_v16 }
   0xd   : > { %s813_s24 = smov (!%p217_p3, %s594_s24), 31 }
   0xe   : > { %s595_s29 = sshll.u32 %s813_s24, 3  ;;  %687 = vmatpush3.bf16.msra.mxu1 %v684_v16 }
   0xf   : > { %s220_s7 = scalar_lea.vmem %s806_s0, %s595_s29  ;;  %s226_s19 = scalar_lea.vmem %s811_s5, %s595_s29 }
  0x10   : > { %v228_v6 = vld [vmem:[%s220_s7] sm:$0xff]  ;;  %v229_v7 = vld [vmem:[%s220_s7 + $0x8] sm:$0xff]  ;;  %v230_v8 = vld [vmem:[%s220_s7 + $0x10] sm:$0xff] }
  0x11   : > { %644 = vmatprep.mubr.msk.f32.mxu0 %vm245_vm0, %v228_v6  ;;  %v231_v9 = vld [vmem:[%s220_s7 + $0x18] sm:$0xff]  ;;  %v232_v10 = vld [vmem:[%s220_s7 + $0x20] sm:$0xff]  ;;  %v233_v11 = vld [vmem:[%s220_s7 + $0x28] sm:$0xff] }
  0x12   : > { %645 = vmatmul.mubr.msk.f32.vlgmr.msra.gmra.mrb[0].mxu0 %vm245_vm0, %v229_v7  ;;  %v234_v12 = vld [vmem:[%s220_s7 + $0x30] sm:$0xff]  ;;  %v235_v13 = vld [vmem:[%s220_s7 + $0x38] sm:$0xff] }
  0x13   : > { %647 = vmatprep.mubr.msk.f32.mxu0 %vm245_vm0, %v230_v8 }
  0x16   : > { %648 = vmatmul.mubr.msk.f32.gmra.mrb[2].mxu0 %vm245_vm0, %v231_v9 }
  0x17   : > { %650 = vmatprep.mubr.msk.f32.mxu0 %vm245_vm0, %v232_v10 }
  0x1a   : > { %651 = vmatmul.mubr.msk.f32.gmra.mrb[4].mxu0 %vm245_vm0, %v233_v11 }
  0x1b   : > { %653 = vmatprep.mubr.msk.f32.mxu0 %vm245_vm0, %v234_v12 }
  0x1e   : > { %654 = vmatmul.mubr.msk.f32.gmra.mrb[6].mxu0 %vm245_vm0, %v235_v13 }
  0xe5   : > { %v646_v18 = vpop.f32.mrb[0].mxu0 }
  0xe6   : > { %v342_v19 = vadd.f32 %v646_v18, %v598_v17  ;;  %v336_v20 = vpop.f32.mrb[1].mxu0 }
  0xe7   : > { %v337_v21 = vadd.f32 %v598_v17, %v336_v20 }
  0xe8   : > { %v376_v24 = vmax.f32 %v342_v19, 0.0 }
  0xe9   : > { %v375_v22 = vmax.f32 %v337_v21, 0.0  ;;  %v649_v23 = vpop.f32.mrb[2].mxu0 }
  0xea   : > { %v352_v25 = vadd.f32 %v649_v23, %v598_v17  ;;  %v346_v26 = vpop.f32.mrb[3].mxu0 }
  0xeb   : > { %v347_v27 = vadd.f32 %v598_v17, %v346_v26  ;;  %664 = vmatprep.mubr.msk.f32.mxu1 %vm394_vm1, %v375_v22 }
  0xec   : > { %665 = vmatmul.mubr.msk.f32.vlgmr.msra.gmra.mrb[0].mxu1 %vm394_vm1, %v376_v24  ;;  %v378_v30 = vmax.f32 %v352_v25, 0.0 }
  0xed   : > { %v377_v28 = vmax.f32 %v347_v27, 0.0  ;;  %v652_v29 = vpop.f32.mrb[4].mxu0 }
  0xee   : > { %v362_v31 = vadd.f32 %v652_v29, %v598_v17  ;;  %v356_v32 = vpop.f32.mrb[5].mxu0 }
  0xef   : > { %v357_v33 = vadd.f32 %v598_v17, %v356_v32  ;;  %667 = vmatprep.mubr.msk.f32.mxu1 %vm394_vm1, %v377_v28 }
  0xf0   : > { %668 = vmatmul.mubr.msk.f32.gmra.mrb[2].mxu1 %vm394_vm1, %v378_v30  ;;  %v380_v36 = vmax.f32 %v362_v31, 0.0 }
  0xf1   : > { %v379_v34 = vmax.f32 %v357_v33, 0.0  ;;  %v655_v35 = vpop.f32.mrb[6].mxu0 }
  0xf2   : > { %v372_v37 = vadd.f32 %v655_v35, %v598_v17  ;;  %v366_v38 = vpop.f32.mrb[7].mxu0 }
  0xf3   : > { %v367_v39 = vadd.f32 %v598_v17, %v366_v38  ;;  %670 = vmatprep.mubr.msk.f32.mxu1 %vm394_vm1, %v379_v34 }
  0xf4   : > { %671 = vmatmul.mubr.msk.f32.gmra.mrb[4].mxu1 %vm394_vm1, %v380_v36  ;;  %v382_v41 = vmax.f32 %v372_v37, 0.0 }
  0xf5   : > { %v381_v40 = vmax.f32 %v367_v39, 0.0 }
  0xf7   : > { %673 = vmatprep.mubr.msk.f32.mxu1 %vm394_vm1, %v381_v40 }
  0xf8   : > { %674 = vmatmul.mubr.msk.f32.gmra.mrb[6].mxu1 %vm394_vm1, %v382_v41 }
 0x1bf   : > { %v666_v43 = vpop.f32.mrb[0].mxu1 }
 0x1c0   : > { %v491_v44 = vadd.f32 %v666_v43, %v607_v42  ;;  %v485_v45 = vpop.f32.mrb[1].mxu1 }
 0x1c1   : > { %v486_v46 = vadd.f32 %v607_v42, %v485_v45 }
 0x1c2   : > { %526 = vst.msk [vmem:[%s226_s19 + $0x8] sm:$0xff] %vm524_vm2, %v491_v44 }
 0x1c3   : > { %525 = vst.msk [vmem:[%s226_s19] sm:$0xff] %vm524_vm2, %v486_v46  ;;  %v669_v47 = vpop.f32.mrb[2].mxu1 }
 0x1c4   : > { %v501_v48 = vadd.f32 %v669_v47, %v607_v42  ;;  %v495_v49 = vpop.f32.mrb[3].mxu1 }
 0x1c5   : > { %v496_v50 = vadd.f32 %v607_v42, %v495_v49 }
 0x1c6   : > { %528 = vst.msk [vmem:[%s226_s19 + $0x18] sm:$0xff] %vm524_vm2, %v501_v48 }
 0x1c7   : > { %527 = vst.msk [vmem:[%s226_s19 + $0x10] sm:$0xff] %vm524_vm2, %v496_v50  ;;  %v672_v51 = vpop.f32.mrb[4].mxu1 }
 0x1c8   : > { %v511_v52 = vadd.f32 %v672_v51, %v607_v42  ;;  %v505_v53 = vpop.f32.mrb[5].mxu1 }
 0x1c9   : > { %v506_v54 = vadd.f32 %v607_v42, %v505_v53 }
 0x1ca   : > { %530 = vst.msk [vmem:[%s226_s19 + $0x28] sm:$0xff] %vm524_vm2, %v511_v52 }
 0x1cb   : > { %529 = vst.msk [vmem:[%s226_s19 + $0x20] sm:$0xff] %vm524_vm2, %v506_v54  ;;  %v675_v55 = vpop.f32.mrb[6].mxu1 }
 0x1cc   : > { %v521_v56 = vadd.f32 %v675_v55, %v607_v42  ;;  %v515_v57 = vpop.f32.mrb[7].mxu1 }
 0x1cd   : > { %v516_v58 = vadd.f32 %v607_v42, %v515_v57 }
 0x1ce   : > { %532 = vst.msk [vmem:[%s226_s19 + $0x38] sm:$0xff] %vm524_vm2, %v521_v56 }
 0x1cf   : > { %531 = vst.msk [vmem:[%s226_s19 + $0x30] sm:$0xff] %vm524_vm2, %v516_v58 }
 0x1d0 PF: > { %s15_s18 = sadd.s32 1, %s702_s18  }
 0x1d1   : > { %p12_p4 = scmp.ge.s32.totalorder %s15_s18, 6  }
 0x1d3   :  { %14 = sbr.rel (!%p12_p4) target bundleno = 1 (0x1), region = 70 }

</bundles_post_ra>
